<compile_context>
chip_gen: v7x
topology: tpu7x:2x2x1
jax: 0.10.0
libtpu: 0.0.40
codegen_flags: <defaults>
</compile_context>

<pallas_src>
import functools
import math

import jax
import jax.numpy as jnp
from jax.experimental import pallas as pl
from jax.experimental.pallas import tpu as pltpu


def _round_up(v, m):
    return (v + m - 1) // m * m


# --------------------------- kernels ---------------------------

def _linear_kernel_single(x_ref, w_ref, b_ref, o_ref):
    # One (i, j) tile with the full K extent: o = x @ w + b.
    acc = jnp.dot(x_ref[...], w_ref[...], preferred_element_type=jnp.float32)
    o_ref[...] = (acc + b_ref[...]).astype(o_ref.dtype)


def _linear_kernel_acc_out(x_ref, w_ref, b_ref, o_ref):
    # K-split, f32 output: accumulate directly in the K-resident output block
    # (output index map ignores k, so the block stays in VMEM across the K axis).
    k = pl.program_id(2)
    part = jnp.dot(x_ref[...], w_ref[...], preferred_element_type=jnp.float32)

    @pl.when(k == 0)
    def _init():
        o_ref[...] = part + b_ref[...]

    @pl.when(k > 0)
    def _accum():
        o_ref[...] += part


def _linear_kernel_acc_scratch(x_ref, w_ref, b_ref, o_ref, acc_ref):
    # K-split, non-f32 output: f32 scratch accumulator, single cast at the end.
    k = pl.program_id(2)
    part = jnp.dot(x_ref[...], w_ref[...], preferred_element_type=jnp.float32)

    @pl.when(k == 0)
    def _init():
        acc_ref[...] = part + b_ref[...]

    @pl.when(k > 0)
    def _accum():
        acc_ref[...] += part

    @pl.when(k == pl.num_programs(2) - 1)
    def _finalize():
        o_ref[...] = acc_ref[...].astype(o_ref.dtype)


# ----------------------- tile selection ------------------------

@functools.lru_cache(maxsize=None)
def _vmem_capacity_bytes():
    try:
        cap = getattr(pltpu.get_tpu_info(), "vmem_capacity_bytes", None)
        if cap:
            return int(cap)
    except Exception:
        pass
    try:
        if "v7" in jax.devices()[0].device_kind.lower():
            return 64 << 20
    except Exception:
        pass
    return 128 << 20


def _tile_caps():
    if _vmem_capacity_bytes() >= (128 << 20):
        # v5e / v6e class: 128 MiB physical VMEM -> big tiles, fewer grid steps,
        # far less weight restreaming and acc RMW per unit of MXU work.
        return dict(tb=1024, tn=512, tk=1024, vmem_limit=96 << 20)
    # v7x class: 64 MiB VMEM per TensorCore -> smaller caps, smaller scoped limit.
    return dict(tb=512, tn=512, tk=512, vmem_limit=48 << 20)


def _pick_lane_tile(dim, cap):
    # 128-multiple tile minimizing the padded extent; ties -> larger tile
    # (fewer grid steps, fuller 256-wide MXU passes on v6e/v7x).
    cands = {128, 256, 512, 1024}
    ru = _round_up(dim, 128)
    if ru <= cap:
        cands.add(ru)
    cands = [c for c in sorted(cands) if c <= cap]
    if not cands:
        return 128
    best_c, best_pad = None, None
    for c in cands:
        pad = _round_up(dim, c)
        if best_pad is None or pad < best_pad or (pad == best_pad and c > best_c):
            best_c, best_pad = c, pad
    return best_c


def _pick_batch_tile(dim, cap, align):
    da = _round_up(dim, align)
    if da <= cap:
        return da
    n_tiles = math.ceil(da / cap)
    return min(_round_up(math.ceil(da / n_tiles), align), cap)


# --------------------------- wrapper ----------------------------

def mlp1_forward(x, weight, bias, *, compute_dtype=None,
                 tile_b=None, tile_n=None, tile_k=None):
    """MLP1.forward: x @ weight.T + bias.

    x: (B, K); weight: (N, K) (PyTorch nn.Linear layout); bias: (N,) -> (B, N).
    """
    B, K = x.shape
    N, Kw = weight.shape
    assert Kw == K and bias.shape == (N,)

    out_dtype = x.dtype
    caps = _tile_caps()
    cdtype = jnp.dtype(compute_dtype) if compute_dtype is not None else jnp.dtype(x.dtype)
    sub_align = {1: 32, 2: 16}.get(cdtype.itemsize, 8)  # sublane packing for narrow dtypes

    # Bias in f32 (accumulation dtype); tiny, one cheap cast.
    b_row = bias.astype(jnp.float32).reshape(1, N)

    explicit_tiles = any(t is not None for t in (tile_b, tile_n, tile_k))
    itemsize = max(cdtype.itemsize, jnp.dtype(out_dtype).itemsize)
    total_bytes = (B * K + K * N + B * N + N) * itemsize

    # ---- Fast path: whole problem in one block (covers the nominal MLP1 size).
    # Full-array blocks are exempt from the (8,128) rule: no padding, no slice,
    # no K axis, no scratch.
    if not explicit_tiles and total_bytes <= (256 << 10):
        xs, wt = x, weight.T
        if compute_dtype is not None:
            xs, wt = xs.astype(cdtype), wt.astype(cdtype)
        return pl.pallas_call(
            _linear_kernel_single,
            out_shape=jax.ShapeDtypeStruct((B, N), out_dtype),
            grid_spec=pltpu.PrefetchScalarGridSpec(
                num_scalar_prefetch=0,
                grid=(1, 1),
                in_specs=[
                    pl.BlockSpec((B, K), lambda i, j: (0, 0)),
                    pl.BlockSpec((K, N), lambda i, j: (0, 0)),
                    pl.BlockSpec((1, N), lambda i, j: (0, 0)),
                ],
                out_specs=pl.BlockSpec((B, N), lambda i, j: (i, j)),
            ),
            compiler_params=pltpu.CompilerParams(
                dimension_semantics=("parallel", "parallel"),
            ),
        )(xs, wt, b_row)

    # ---- Tiled path.
    tb = tile_b if tile_b is not None else _pick_batch_tile(B, caps["tb"], sub_align)
    tn = tile_n if tile_n is not None else _pick_lane_tile(N, caps["tn"])
    tk = tile_k if tile_k is not None else _pick_lane_tile(K, caps["tk"])

    Bp, Np, Kp = _round_up(B, tb), _round_up(N, tn), _round_up(K, tk)

    # Pre-transpose (and pad only when needed) the weight ONCE: the kernel then
    # runs a native (tb,tk)@(tk,tn) matmul with no per-tile transposed contraction.
    xs = x if (Bp == B and Kp == K) else jnp.pad(x, ((0, Bp - B), (0, Kp - K)))
    wt = weight.T  # (K, N)
    if Kp != K or Np != N:
        wt = jnp.pad(wt, ((0, Kp - K), (0, Np - N)))
    bs = b_row if Np == N else jnp.pad(b_row, ((0, 0), (0, Np - N)))
    if compute_dtype is not None:
        xs, wt = xs.astype(cdtype), wt.astype(cdtype)

    nk = Kp // tk
    vmem_limit = caps["vmem_limit"]

    if nk == 1:
        out_padded = pl.pallas_call(
            _linear_kernel_single,
            out_shape=jax.ShapeDtypeStruct((Bp, Np), out_dtype),
            grid_spec=pltpu.PrefetchScalarGridSpec(
                num_scalar_prefetch=0,
                grid=(Bp // tb, Np // tn),
                in_specs=[
                    pl.BlockSpec((tb, tk), lambda i, j: (i, 0)),
                    pl.BlockSpec((tk, tn), lambda i, j: (0, j)),
                    pl.BlockSpec((1, tn), lambda i, j: (0, j)),
                ],
                out_specs=pl.BlockSpec((tb, tn), lambda i, j: (i, j)),
            ),
            compiler_params=pltpu.CompilerParams(
                dimension_semantics=("parallel", "parallel"),
                vmem_limit_bytes=vmem_limit,
            ),
        )(xs, wt, bs)
    else:
        grid = (Bp // tb, Np // tn, nk)
        in_specs = [
            pl.BlockSpec((tb, tk), lambda i, j, k: (i, k)),
            pl.BlockSpec((tk, tn), lambda i, j, k: (k, j)),
            pl.BlockSpec((1, tn), lambda i, j, k: (0, j)),
        ]
        out_spec = pl.BlockSpec((tb, tn), lambda i, j, k: (i, j))
        cparams = pltpu.CompilerParams(
            dimension_semantics=("parallel", "parallel", "arbitrary"),
            vmem_limit_bytes=vmem_limit,
        )
        if out_dtype == jnp.float32:
            out_padded = pl.pallas_call(
                _linear_kernel_acc_out,
                out_shape=jax.ShapeDtypeStruct((Bp, Np), out_dtype),
                grid_spec=pltpu.PrefetchScalarGridSpec(
                    num_scalar_prefetch=0, grid=grid,
                    in_specs=in_specs, out_specs=out_spec,
                ),
                compiler_params=cparams,
            )(xs, wt, bs)
        else:
            out_padded = pl.pallas_call(
                _linear_kernel_acc_scratch,
                out_shape=jax.ShapeDtypeStruct((Bp, Np), out_dtype),
                grid_spec=pltpu.PrefetchScalarGridSpec(
                    num_scalar_prefetch=0, grid=grid,
                    in_specs=in_specs, out_specs=out_spec,
                    scratch_shapes=[pltpu.VMEM((tb, tn), jnp.float32)],
                ),
                compiler_params=cparams,
            )(xs, wt, bs)

    if Bp == B and Np == N:
        return out_padded
    return out_padded[:B, :N]


if __name__ == "__main__":
    key = jax.random.PRNGKey(0)
    kx, kw, kb = jax.random.split(key, 3)

    # Nominal MLP1 shapes: Linear(input_size=32, output_size=64), batch=8.
    B, input_size, output_size = 8, 32, 64
    x = jax.random.normal(kx, (B, input_size), dtype=jnp.float32)
    weight = jax.random.normal(kw, (output_size, input_size), dtype=jnp.float32) * 0.02
    bias = jax.random.normal(kb, (output_size,), dtype=jnp.float32) * 0.02

    out = jax.block_until_ready(mlp1_forward(x, weight, bias))
    ref = x @ weight.T + bias
    assert out.shape == (B, output_size)
    assert jnp.allclose(out, ref, atol=1e-5, rtol=1e-5)

    # Larger shape with auto tiles: exercises the tiled path with padding-minimizing
    # tile selection (tn/tk snap to 384 -> no padding, single K step).
    k2x, k2w, k2b = jax.random.split(jax.random.PRNGKey(1), 3)
    B2, K2, N2 = 192, 384, 320
    x2 = jax.random.normal(k2x, (B2, K2), dtype=jnp.float32)
    w2 = jax.random.normal(k2w, (N2, K2), dtype=jnp.float32) * 0.02
    b2 = jax.random.normal(k2b, (N2,), dtype=jnp.float32) * 0.02
    ref2 = x2 @ w2.T + b2
    out2 = jax.block_until_ready(mlp1_forward(x2, w2, b2))
    assert jnp.allclose(out2, ref2, atol=1e-4, rtol=1e-4)

    # Forced small tiles: exercises the K-accumulation grid with the f32
    # accumulate-into-output kernel plus N padding and the output slice.
    out3 = jax.block_until_ready(
        mlp1_forward(x2, w2, b2, tile_b=64, tile_n=128, tile_k=128))
    assert jnp.allclose(out3, ref2, atol=1e-4, rtol=1e-4)

    # bf16 inputs with a K split: exercises the scratch-accumulator kernel
    # (non-f32 output) on the bf16 MXU path; f32 accumulation keeps error small.
    x4 = x2.astype(jnp.bfloat16)
    w4 = w2.astype(jnp.bfloat16)
    out4 = jax.block_until_ready(
        mlp1_forward(x4, w4, b2, tile_b=64, tile_n=128, tile_k=128))
    max_err = jnp.max(jnp.abs(out4.astype(jnp.float32) - ref2))
    assert max_err < 0.05, max_err

    print("KERNEL_OK")
</pallas_src>

<mosaic_0001>
module attributes {stable_mosaic.version = 11 : i64} {
  func.func @_linear_kernel_single(%arg0: i32, %arg1: i32, %arg2: memref<8x32xf32, #tpu.memory_space<vmem>>, %arg3: memref<32x64xf32, #tpu.memory_space<vmem>>, %arg4: memref<1x64xf32, #tpu.memory_space<vmem>>, %arg5: memref<8x64xf32, #tpu.memory_space<vmem>>) attributes {dimension_semantics = [#tpu.dimension_semantics<parallel>, #tpu.dimension_semantics<parallel>], iteration_bounds = array<i64: 1, 1>, scalar_prefetch = 0 : i64, scratch_operands = 0 : i64, tpu.core_type = #tpu.core_type<tc>, window_params = [{pipeline_mode = #tpu.pipeline_mode<synchronous>, transform_indices = @transform_0, window_bounds = array<i64: 8, 32>}, {pipeline_mode = #tpu.pipeline_mode<synchronous>, transform_indices = @transform_1, window_bounds = array<i64: 32, 64>}, {pipeline_mode = #tpu.pipeline_mode<synchronous>, transform_indices = @transform_2, window_bounds = array<i64: 1, 64>}, {transform_indices = @transform_3, window_bounds = array<i64: 8, 64>}]} {
    %c0 = arith.constant 0 : index
    %c0_0 = arith.constant 0 : index
    %0 = vector.load %arg2[%c0, %c0_0] : memref<8x32xf32, #tpu.memory_space<vmem>>, vector<8x32xf32>
    %c0_1 = arith.constant 0 : index
    %c0_2 = arith.constant 0 : index
    %1 = vector.load %arg3[%c0_1, %c0_2] : memref<32x64xf32, #tpu.memory_space<vmem>>, vector<32x64xf32>
    %cst = arith.constant dense<0.000000e+00> : vector<8x64xf32>
    %2 = tpu.matmul %0, %1, %cst {dimension_numbers = #tpu.dot_dimension_numbers<[1], [0], [0], [1], [0, 0, 1, 1], [], []>} : vector<8x32xf32>, vector<32x64xf32>, vector<8x64xf32> -> vector<8x64xf32>
    %c0_3 = arith.constant 0 : index
    %c0_4 = arith.constant 0 : index
    %3 = vector.load %arg4[%c0_3, %c0_4] : memref<1x64xf32, #tpu.memory_space<vmem>>, vector<1x64xf32>
    %4 = vector.broadcast %3 : vector<1x64xf32> to vector<8x64xf32>
    %5 = arith.addf %2, %4 : vector<8x64xf32>
    %c0_5 = arith.constant 0 : index
    %c0_6 = arith.constant 0 : index
    %6 = vector.load %arg5[%c0_5, %c0_6] : memref<8x64xf32, #tpu.memory_space<vmem>>, vector<8x64xf32>
    tpu.vector_store %arg5[%c0_5, %c0_6], %5 {strides = array<i32>} : memref<8x64xf32, #tpu.memory_space<vmem>>, vector<8x64xf32>,
    return
  }
  func.func @transform_0(%arg0: i32, %arg1: i32) -> (i32, i32) {
    %c0_i32 = arith.constant 0 : i32
    %c0_i32_0 = arith.constant 0 : i32
    %c0_i32_1 = arith.constant 0 : i32
    return %c0_i32, %c0_i32_0 : i32, i32
  }
  func.func @transform_1(%arg0: i32, %arg1: i32) -> (i32, i32) {
    %c0_i32 = arith.constant 0 : i32
    %c0_i32_0 = arith.constant 0 : i32
    %c0_i32_1 = arith.constant 0 : i32
    return %c0_i32, %c0_i32_0 : i32, i32
  }
  func.func @transform_2(%arg0: i32, %arg1: i32) -> (i32, i32) {
    %c0_i32 = arith.constant 0 : i32
    %c0_i32_0 = arith.constant 0 : i32
    %c0_i32_1 = arith.constant 0 : i32
    return %c0_i32, %c0_i32_0 : i32, i32
  }
  func.func @transform_3(%arg0: i32, %arg1: i32) -> (i32, i32) {
    %c0_i32 = arith.constant 0 : i32
    return %arg0, %arg1 : i32, i32
  }
}

</mosaic_0001>

<bundles_post_ra>
// kernel: tpu_custom_call.1
= control target key start
LH: loop header
LB: loop body
LE: loop exit
PB: predicated region body
PF: predicated region fallthrough
CT: control target
= control target key end

     0   :  { %8 = vsyncpa [#allocation3], 0  ;;  %s323_s0 = inlined_call_operand.hbm [shape: f32[8,32], index: 0, kind: input, shape index: {}]   ;;  %s324_s1 = inlined_call_operand.hbm [shape: f32[32,64], index: 1, kind: input, shape index: {}]   ;;  %s325_s2 = inlined_call_operand.vmem [shape: f32[1,64], index: 2, kind: input, shape index: {}]   ;;  %s326_s3 = inlined_call_operand.hbm [shape: f32[8,64], index: 3, kind: output, shape index: {}]  }
   0x1   :  { %9 = vsyncpa [#allocation6], 0 }
   0x2   :  { %10 = vsyncpa [#allocation4], 0  ;;  %s249_s12 = smov [#allocation2]   ;;  %s250_s14 = smov [#allocation5]  }
   0x3   :  { %s17_s13 = sshll.u32 %s249_s12, 4  ;;  %s26_s15 = sshll.u32 %s250_s14, 4  ;;  %s18_s13 = int_to_ptr.vmem [resolvable:$true] %s17_s13  ;;  %s277_s15 = int_to_ptr.vmem [resolvable:$true] %s26_s15 }
   0x4   :  { %s177_s18 = scalar_lea.hbm %s323_s0, 128 }
   0x5   :  { %p178_p0 = scmp.ne.s32.totalorder %s323_s0, %s177_s18  ;;  %p181_p1 = scmp.lt.u32.totalorder %s177_s18, %s323_s0 }
   0x7   :  { %p183_p2 = pnand %p181_p1, %p178_p0 }
   0x9   :  { %186 = shalt.err (!%p183_p2)
}
   0xa   :  { %s187_s23 = scalar_lea.vmem %s18_s13, 128  ;;  %p192_p4 = scmp.lt.s32.totalorder %s18_s13, %s18_s13 }
   0xb   :  { %p188_p3 = scmp.ne.s32.totalorder %s18_s13, %s187_s23  ;;  %p193_p5 = scmp.lt.s32.totalorder %s187_s23, %s187_s23 }
   0xd   :  { %p194_p6 = por %p193_p5, %p192_p4 }
   0xf   :  { %p195_p7 = pnand %p194_p6, %p188_p3 }
  0x11   :  { %198 = shalt.err (!%p195_p7)
}
  0x12   :  { %20 = dma.hbm_to_vmem [thread:$0]  %s323_s0, 128, %s18_s13, [#allocation3]  }
  0x13   :  { %s199_s28 = scalar_lea.hbm %s324_s1, 512 }
  0x14   :  { %p200_p8 = scmp.ne.s32.totalorder %s324_s1, %s199_s28  ;;  %p203_p9 = scmp.lt.u32.totalorder %s199_s28, %s324_s1 }
  0x16   :  { %p205_p10 = pnand %p203_p9, %p200_p8 }
  0x18   :  { %208 = shalt.err (!%p205_p10)
}
  0x19   :  { %s209_s6 = scalar_lea.vmem %s277_s15, 512  ;;  %p214_p12 = scmp.lt.s32.totalorder %s277_s15, %s277_s15 }
  0x1a   :  { %p210_p11 = scmp.ne.s32.totalorder %s277_s15, %s209_s6  ;;  %p215_p13 = scmp.lt.s32.totalorder %s209_s6, %s209_s6 }
  0x1c   :  { %p216_p0 = por %p215_p13, %p214_p12 }
  0x1e   :  { %p217_p1 = pnand %p216_p0, %p210_p11 }
  0x20   :  { %220 = shalt.err (!%p217_p1)
}
  0x21   :  { %s251_s0 = smov 128   ;;  %s252_s7 = smov 8  }
  0x22   :  { %32 = dma.hbm_to_vmem [thread:$0]  %s324_s1, 512, %s277_s15, [#allocation6], %s251_s0, %s251_s0, %s252_s7  }
  0x23   :  { %243 = dma.done.wait [#allocation3], 128  }
  0x24   :  { %244 = vsyncadd [#allocation3], 4294967168 }
  0x25   :  { %245 = dma.done.wait [#allocation6], 512  }
  0x26   :  { %246 = vsyncadd [#allocation6], 4294966784  ;;  %v253_v0 = vmov 0.0|0.0   ;;  %vm254_vm0 = vmmov 0   ;;  %v255_v1 = vmov 0.0   ;;  %v42_v2 = vld [vmem:[#allocation5] sm:$0xff] }
  0x27   :  { %163 = vmatprep.subr.bf16.mxu0 %v253_v0  ;;  %160 = vmatprep.mubr.msk.f32.mxu0 %vm254_vm0, %v255_v1  ;;  %v43_v3 = vld [vmem:[#allocation5 + $0x8] sm:$0xff]  ;;  %v44_v4 = vld [vmem:[#allocation5 + $0x10] sm:$0xff]  ;;  %v45_v6 = vld [vmem:[#allocation5 + $0x18] sm:$0xff]  ;;  %vm53_vm1 = vcmask 261120   ;;  %s256_s11 = smov [#allocation7]   ;;  %vm127_vm2 = vcmask 523264  }
  0x28   :  { %v164_v5 = vpack.c.bf16 %v43_v3, %v42_v2  ;;  %v167_v7 = vpack.c.bf16 %v45_v6, %v44_v4  ;;  %v41_v8 = vld [vmem:[#allocation2] sm:$0xff]  ;;  %s135_s12 = sshll.u32 %s256_s11, 4  ;;  %s136_s12 = int_to_ptr.vmem [resolvable:$true] %s135_s12 }
  0x29   :  { %v145_v9 = vld [vmem:[%s325_s2] ss:$0 sm:$0xff]  ;;  %s221_s13 = scalar_lea.vmem %s136_s12, 128  ;;  %p226_p3 = scmp.lt.s32.totalorder %s136_s12, %s136_s12 }
  0x2a   :  { %165 = vmatpush3.bf16.msra.mxu0 %v164_v5  ;;  %p222_p2 = scmp.ne.s32.totalorder %s136_s12, %s221_s13  ;;  %p227_p4 = scmp.lt.s32.totalorder %s221_s13, %s221_s13 }
  0x2b   :  { %166 = vmatprep.subr.bf16.mxu0 %v253_v0 }
  0x2c   :  { %p228_p5 = por %p227_p4, %p226_p3 }
  0x2e   :  { %168 = vmatpush3.bf16.msra.mxu0 %v167_v7  ;;  %p229_p6 = pnand %p228_p5, %p222_p2 }
  0x31   :  { %161 = vmatmul.mubr.msk.f32.vlgmr.msra.gmra.mrb[0].mxu0 %vm53_vm1, %v41_v8 }
 0x104   :  { %v123_v10 = vpop.f32.mrb[0].mxu0 }
 0x105   :  { %v124_v11 = vadd.f32 %v145_v9, %v123_v10  ;;  %v162_v12 = vpop.f32.mrb[1].mxu0 }
 0x107   :  { %128 = vst.msk [vmem:[#allocation7] sm:$0xff] %vm127_vm2, %v124_v11 }
 0x108   :  { %232 = shalt.err (!%p229_p6)
}
 0x109   :  { %s233_s16 = scalar_lea.hbm %s326_s3, 128 }
 0x10a   :  { %p234_p7 = scmp.ne.s32.totalorder %s326_s3, %s233_s16  ;;  %p237_p8 = scmp.lt.u32.totalorder %s233_s16, %s326_s3 }
 0x10c   :  { %p239_p9 = pnand %p237_p8, %p234_p7 }
 0x10e   :  { %242 = shalt.err (!%p239_p9)
}
 0x10f   :  { %138 = dma.vmem_to_hbm [thread:$0]  %s136_s12, 128, %s326_s3, [#allocation4]  }
 0x110   :  { %247 = dma.done.wait [#allocation4], 128  }
 0x111   :  { %248 = vsyncadd [#allocation4], 4294967168 }
 0x112   :  { %142 = vsyncpa [#allocation3], 1 }
 0x113   :  { %143 = vsyncpa [#allocation6], 1 }
 0x114   :  { %144 = vsyncpa [#allocation4], 1 }

</bundles_post_ra>
